<compile_context>
chip_gen: v5e
topology: v5e:2x2
jax: 0.10.0
libtpu: 0.0.40
codegen_flags: <defaults>
</compile_context>

<pallas_src>
import functools

import jax
import jax.numpy as jnp
from jax.experimental import pallas as pl
from jax.experimental.pallas import tpu as pltpu

_LANE = 128      # vreg lane width
_SUBLANE = 8     # vreg sublane count (fp32)


def _round_up(n, m):
    return ((n + m - 1) // m) * m


# --------------------------------------------------------------------------- #
# Kernel
# --------------------------------------------------------------------------- #
def _fused_ddm_kernel(x_ref, *refs, num_layers, mxu_dtype):
    """Fused forward of the whole BayesianLinear stack (single grid step).

    refs = [w_mu_0, w_std_0, w_eps_0, b_mu_0, b_std_0, b_eps_0,
            ...,
            o_ref]
    Weights are pre-transposed/padded to (in_p, out_p); biases are (1, out_p).
    Padded mu/std entries are 0 -> sampled padded weights are exactly 0.
    """
    o_ref = refs[-1]
    p = refs[:-1]

    h = x_ref[...]                                           # (B_p, in_p) fp32
    for li in range(num_layers):
        wmu_ref, wstd_ref, weps_ref, bmu_ref, bstd_ref, beps_ref = \
            p[6 * li: 6 * li + 6]

        # Reparameterized sample: plain VPU FMA (std precomputed outside, so
        # no transcendental on the critical path).
        w = wmu_ref[...] + wstd_ref[...] * weps_ref[...]     # (in_p, out_p)
        b = bmu_ref[...] + bstd_ref[...] * beps_ref[...]     # (1,  out_p)

        # MXU matmul, fp32 accumulation.
        y = jnp.dot(h.astype(mxu_dtype), w.astype(mxu_dtype),
                    preferred_element_type=jnp.float32) + b
        if li < num_layers - 1:
            y = jnp.maximum(y, 0.0)                          # ReLU
        h = y

    o_ref[...] = h.astype(o_ref.dtype)


# --------------------------------------------------------------------------- #
# One-time parameter preparation (hoisted out of the per-call forward)
# --------------------------------------------------------------------------- #
def prepare_ddm_flowed_params(params, in_dim):
    """Pad, transpose to (in, out), and precompute std = exp(logstd) ONCE.

    params: list of dicts with PyTorch-layout parameters:
              w_mu, w_logstd : (out, in)
              b_mu, b_logstd : (out,)
    Returns a list of per-layer dicts of padded fp32 tensors + dims.
    """
    d_in_p = _round_up(in_dim, _LANE)
    prepared = []
    for layer in params:
        d_out, d_in = layer["w_mu"].shape
        d_out_p = _round_up(d_out, _LANE)
        w_mu = (jnp.zeros((d_in_p, d_out_p), jnp.float32)
                .at[:d_in, :d_out].set(layer["w_mu"].T))
        w_std = (jnp.zeros((d_in_p, d_out_p), jnp.float32)
                 .at[:d_in, :d_out].set(jnp.exp(layer["w_logstd"]).T))
        b_mu = (jnp.zeros((1, d_out_p), jnp.float32)
                .at[0, :d_out].set(layer["b_mu"].reshape(-1)))
        b_std = (jnp.zeros((1, d_out_p), jnp.float32)
                 .at[0, :d_out].set(jnp.exp(layer["b_logstd"]).reshape(-1)))
        prepared.append(dict(w_mu=w_mu, w_std=w_std, b_mu=b_mu, b_std=b_std,
                             d_in=d_in, d_out=d_out,
                             d_in_p=d_in_p, d_out_p=d_out_p))
        d_in_p = d_out_p
    return prepared


def _sample_eps(prepared, noise_key):
    """Draw per-layer N(0,1) noise at padded shapes (padded std is 0 anyway)."""
    keys = jax.random.split(noise_key, 2 * len(prepared))
    eps = []
    for li, lp in enumerate(prepared):
        w_eps = jax.random.normal(keys[2 * li],
                                  (lp["d_in_p"], lp["d_out_p"]), jnp.float32)
        b_eps = jax.random.normal(keys[2 * li + 1],
                                  (1, lp["d_out_p"]), jnp.float32)
        eps.append((w_eps, b_eps))
    return eps


# --------------------------------------------------------------------------- #
# Forward wrapper
# --------------------------------------------------------------------------- #
def ddm_flowed_forward(x, prepared, noise_key, *,
                       mxu_dtype=jnp.float32,
                       vmem_limit_bytes=48 * 1024 * 1024):
    """Full forward pass of DdmFlowed (sampling, deterministic=False).

    x:         (B, in_dim) fp32
    prepared:  output of prepare_ddm_flowed_params (padded, pre-transposed)
    noise_key: jax PRNG key used to draw the reparameterization noise
    Returns (B, out_dim) fp32.
    """
    B, in_dim = x.shape
    num_layers = len(prepared)
    out_dim = prepared[-1]["d_out"]

    B_p = _round_up(B, _SUBLANE)
    in_p = prepared[0]["d_in_p"]
    out_p = prepared[-1]["d_out_p"]

    # Zero-pad the input (extra columns hit zero weights; extra batch rows are
    # sliced off at the end).
    x_p = jnp.zeros((B_p, in_p), jnp.float32).at[:B, :in_dim].set(x)

    def full2d(shape):
        return pl.BlockSpec(shape, lambda i: (0, 0))

    eps = _sample_eps(prepared, noise_key)

    flat_args = [x_p]
    in_specs = [full2d((B_p, in_p))]
    for lp, (w_eps, b_eps) in zip(prepared, eps):
        d_in_p, d_out_p = lp["d_in_p"], lp["d_out_p"]
        flat_args += [lp["w_mu"], lp["w_std"], w_eps,
                      lp["b_mu"], lp["b_std"], b_eps]
        in_specs += [full2d((d_in_p, d_out_p))] * 3 + [full2d((1, d_out_p))] * 3

    kernel = functools.partial(_fused_ddm_kernel,
                               num_layers=num_layers, mxu_dtype=mxu_dtype)

    out_padded = pl.pallas_call(
        kernel,
        out_shape=jax.ShapeDtypeStruct((B_p, out_p), jnp.float32),
        grid=(1,),
        in_specs=in_specs,
        out_specs=full2d((B_p, out_p)),
        compiler_params=pltpu.CompilerParams(
            dimension_semantics=("arbitrary",),
            vmem_limit_bytes=vmem_limit_bytes),
    )(*flat_args)

    return out_padded[:B, :out_dim]


# --------------------------------------------------------------------------- #
# Pure-JAX reference (same padded params, same eps) for correctness checking
# --------------------------------------------------------------------------- #
def ddm_flowed_reference(x, prepared, noise_key):
    B, in_dim = x.shape
    B_p = _round_up(B, _SUBLANE)
    in_p = prepared[0]["d_in_p"]
    out_dim = prepared[-1]["d_out"]
    h = jnp.zeros((B_p, in_p), jnp.float32).at[:B, :in_dim].set(x)
    eps = _sample_eps(prepared, noise_key)
    n = len(prepared)
    for li, (lp, (w_eps, b_eps)) in enumerate(zip(prepared, eps)):
        w = lp["w_mu"] + lp["w_std"] * w_eps
        b = lp["b_mu"] + lp["b_std"] * b_eps
        h = h @ w + b
        if li < n - 1:
            h = jnp.maximum(h, 0.0)
    return h[:B, :out_dim]


# --------------------------------------------------------------------------- #
# Synthetic parameter init (PyTorch layout)
# --------------------------------------------------------------------------- #
def init_ddm_flowed_params(key, in_dim, hidden_dim, out_dim, hidden_layers,
                           layer_init_logstd_mean, layer_init_logstd_std):
    dims = [in_dim] + [hidden_dim] * (hidden_layers + 1) + [out_dim]
    params = []
    for li in range(len(dims) - 1):
        d_in, d_out = dims[li], dims[li + 1]
        key, k1, k2, k3, k4 = jax.random.split(key, 5)
        bound = 1.0 / jnp.sqrt(jnp.float32(d_in))
        params.append(dict(
            w_mu=jax.random.uniform(k1, (d_out, d_in), jnp.float32,
                                    minval=-bound, maxval=bound),
            w_logstd=(layer_init_logstd_mean
                      + layer_init_logstd_std
                      * jax.random.normal(k2, (d_out, d_in), jnp.float32)),
            b_mu=jax.random.uniform(k3, (d_out,), jnp.float32,
                                    minval=-bound, maxval=bound),
            b_logstd=(layer_init_logstd_mean
                      + layer_init_logstd_std
                      * jax.random.normal(k4, (d_out,), jnp.float32)),
        ))
    return params


if __name__ == "__main__":
    # Small shapes consistent with the module's forward.
    in_dim, hidden_dim, out_dim = 16, 32, 8
    hidden_layers = 1
    batch = 8
    layer_init_logstd_mean, layer_init_logstd_std = -3.0, 0.1

    root = jax.random.PRNGKey(0)
    k_param, k_data, k_noise = jax.random.split(root, 3)

    params = init_ddm_flowed_params(
        k_param, in_dim, hidden_dim, out_dim, hidden_layers,
        layer_init_logstd_mean, layer_init_logstd_std)

    # One-time parameter preparation (pad/transpose/exp) — NOT per forward.
    prepared = prepare_ddm_flowed_params(params, in_dim)

    x = jax.random.normal(k_data, (batch, in_dim), jnp.float32)

    out = ddm_flowed_forward(x, prepared, k_noise)
    out = jax.block_until_ready(out)
    assert out.shape == (batch, out_dim), out.shape
    assert bool(jnp.all(jnp.isfinite(out)))

    # Correctness vs. a pure-JAX reference using identical params and noise.
    ref = jax.block_until_ready(ddm_flowed_reference(x, prepared, k_noise))
    assert bool(jnp.allclose(out, ref, rtol=1e-3, atol=1e-3)), (
        float(jnp.max(jnp.abs(out - ref))))

    print("KERNEL_OK")
</pallas_src>

<mosaic_0001>
module attributes {stable_mosaic.version = 11 : i64} {
  func.func @_fused_ddm_kernel(%arg0: i32, %arg1: memref<8x128xf32, #tpu.memory_space<vmem>>, %arg2: memref<128x128xf32, #tpu.memory_space<vmem>>, %arg3: memref<128x128xf32, #tpu.memory_space<vmem>>, %arg4: memref<128x128xf32, #tpu.memory_space<vmem>>, %arg5: memref<1x128xf32, #tpu.memory_space<vmem>>, %arg6: memref<1x128xf32, #tpu.memory_space<vmem>>, %arg7: memref<1x128xf32, #tpu.memory_space<vmem>>, %arg8: memref<128x128xf32, #tpu.memory_space<vmem>>, %arg9: memref<128x128xf32, #tpu.memory_space<vmem>>, %arg10: memref<128x128xf32, #tpu.memory_space<vmem>>, %arg11: memref<1x128xf32, #tpu.memory_space<vmem>>, %arg12: memref<1x128xf32, #tpu.memory_space<vmem>>, %arg13: memref<1x128xf32, #tpu.memory_space<vmem>>, %arg14: memref<128x128xf32, #tpu.memory_space<vmem>>, %arg15: memref<128x128xf32, #tpu.memory_space<vmem>>, %arg16: memref<128x128xf32, #tpu.memory_space<vmem>>, %arg17: memref<1x128xf32, #tpu.memory_space<vmem>>, %arg18: memref<1x128xf32, #tpu.memory_space<vmem>>, %arg19: memref<1x128xf32, #tpu.memory_space<vmem>>, %arg20: memref<8x128xf32, #tpu.memory_space<vmem>>) attributes {dimension_semantics = [#tpu.dimension_semantics<arbitrary>], iteration_bounds = array<i64: 1>, scalar_prefetch = 0 : i64, scratch_operands = 0 : i64, tpu.core_type = #tpu.core_type<tc>, window_params = [{pipeline_mode = #tpu.pipeline_mode<synchronous>, transform_indices = @transform_0, window_bounds = array<i64: 8, 128>}, {pipeline_mode = #tpu.pipeline_mode<synchronous>, transform_indices = @transform_1, window_bounds = array<i64: 128, 128>}, {pipeline_mode = #tpu.pipeline_mode<synchronous>, transform_indices = @transform_2, window_bounds = array<i64: 128, 128>}, {pipeline_mode = #tpu.pipeline_mode<synchronous>, transform_indices = @transform_3, window_bounds = array<i64: 128, 128>}, {pipeline_mode = #tpu.pipeline_mode<synchronous>, transform_indices = @transform_4, window_bounds = array<i64: 1, 128>}, {pipeline_mode = #tpu.pipeline_mode<synchronous>, transform_indices = @transform_5, window_bounds = array<i64: 1, 128>}, {pipeline_mode = #tpu.pipeline_mode<synchronous>, transform_indices = @transform_6, window_bounds = array<i64: 1, 128>}, {pipeline_mode = #tpu.pipeline_mode<synchronous>, transform_indices = @transform_7, window_bounds = array<i64: 128, 128>}, {pipeline_mode = #tpu.pipeline_mode<synchronous>, transform_indices = @transform_8, window_bounds = array<i64: 128, 128>}, {pipeline_mode = #tpu.pipeline_mode<synchronous>, transform_indices = @transform_9, window_bounds = array<i64: 128, 128>}, {pipeline_mode = #tpu.pipeline_mode<synchronous>, transform_indices = @transform_10, window_bounds = array<i64: 1, 128>}, {pipeline_mode = #tpu.pipeline_mode<synchronous>, transform_indices = @transform_11, window_bounds = array<i64: 1, 128>}, {pipeline_mode = #tpu.pipeline_mode<synchronous>, transform_indices = @transform_12, window_bounds = array<i64: 1, 128>}, {pipeline_mode = #tpu.pipeline_mode<synchronous>, transform_indices = @transform_13, window_bounds = array<i64: 128, 128>}, {pipeline_mode = #tpu.pipeline_mode<synchronous>, transform_indices = @transform_14, window_bounds = array<i64: 128, 128>}, {pipeline_mode = #tpu.pipeline_mode<synchronous>, transform_indices = @transform_15, window_bounds = array<i64: 128, 128>}, {pipeline_mode = #tpu.pipeline_mode<synchronous>, transform_indices = @transform_16, window_bounds = array<i64: 1, 128>}, {pipeline_mode = #tpu.pipeline_mode<synchronous>, transform_indices = @transform_17, window_bounds = array<i64: 1, 128>}, {pipeline_mode = #tpu.pipeline_mode<synchronous>, transform_indices = @transform_18, window_bounds = array<i64: 1, 128>}, {pipeline_mode = #tpu.pipeline_mode<synchronous>, transform_indices = @transform_19, window_bounds = array<i64: 8, 128>}]} {
    %c0 = arith.constant 0 : index
    %c0_0 = arith.constant 0 : index
    %0 = vector.load %arg1[%c0, %c0_0] : memref<8x128xf32, #tpu.memory_space<vmem>>, vector<8x128xf32>
    %c0_1 = arith.constant 0 : index
    %c0_2 = arith.constant 0 : index
    %1 = vector.load %arg2[%c0_1, %c0_2] : memref<128x128xf32, #tpu.memory_space<vmem>>, vector<128x128xf32>
    %c0_3 = arith.constant 0 : index
    %c0_4 = arith.constant 0 : index
    %2 = vector.load %arg3[%c0_3, %c0_4] : memref<128x128xf32, #tpu.memory_space<vmem>>, vector<128x128xf32>
    %c0_5 = arith.constant 0 : index
    %c0_6 = arith.constant 0 : index
    %3 = vector.load %arg4[%c0_5, %c0_6] : memref<128x128xf32, #tpu.memory_space<vmem>>, vector<128x128xf32>
    %4 = arith.mulf %2, %3 : vector<128x128xf32>
    %5 = arith.addf %1, %4 : vector<128x128xf32>
    %c0_7 = arith.constant 0 : index
    %c0_8 = arith.constant 0 : index
    %6 = vector.load %arg5[%c0_7, %c0_8] : memref<1x128xf32, #tpu.memory_space<vmem>>, vector<1x128xf32>
    %c0_9 = arith.constant 0 : index
    %c0_10 = arith.constant 0 : index
    %7 = vector.load %arg6[%c0_9, %c0_10] : memref<1x128xf32, #tpu.memory_space<vmem>>, vector<1x128xf32>
    %c0_11 = arith.constant 0 : index
    %c0_12 = arith.constant 0 : index
    %8 = vector.load %arg7[%c0_11, %c0_12] : memref<1x128xf32, #tpu.memory_space<vmem>>, vector<1x128xf32>
    %9 = arith.mulf %7, %8 : vector<1x128xf32>
    %10 = arith.addf %6, %9 : vector<1x128xf32>
    %cst = arith.constant dense<0.000000e+00> : vector<8x128xf32>
    %11 = tpu.matmul %0, %5, %cst {dimension_numbers = #tpu.dot_dimension_numbers<[1], [0], [0], [1], [0, 0, 1, 1], [], []>} : vector<8x128xf32>, vector<128x128xf32>, vector<8x128xf32> -> vector<8x128xf32>
    %12 = vector.broadcast %10 : vector<1x128xf32> to vector<8x128xf32>
    %13 = arith.addf %11, %12 : vector<8x128xf32>
    %cst_13 = arith.constant 0.000000e+00 : f32
    %14 = vector.broadcast %cst_13 : f32 to vector<8x128xf32>
    %15 = arith.maximumf %13, %14 : vector<8x128xf32>
    %c0_14 = arith.constant 0 : index
    %c0_15 = arith.constant 0 : index
    %16 = vector.load %arg8[%c0_14, %c0_15] : memref<128x128xf32, #tpu.memory_space<vmem>>, vector<128x128xf32>
    %c0_16 = arith.constant 0 : index
    %c0_17 = arith.constant 0 : index
    %17 = vector.load %arg9[%c0_16, %c0_17] : memref<128x128xf32, #tpu.memory_space<vmem>>, vector<128x128xf32>
    %c0_18 = arith.constant 0 : index
    %c0_19 = arith.constant 0 : index
    %18 = vector.load %arg10[%c0_18, %c0_19] : memref<128x128xf32, #tpu.memory_space<vmem>>, vector<128x128xf32>
    %19 = arith.mulf %17, %18 : vector<128x128xf32>
    %20 = arith.addf %16, %19 : vector<128x128xf32>
    %c0_20 = arith.constant 0 : index
    %c0_21 = arith.constant 0 : index
    %21 = vector.load %arg11[%c0_20, %c0_21] : memref<1x128xf32, #tpu.memory_space<vmem>>, vector<1x128xf32>
    %c0_22 = arith.constant 0 : index
    %c0_23 = arith.constant 0 : index
    %22 = vector.load %arg12[%c0_22, %c0_23] : memref<1x128xf32, #tpu.memory_space<vmem>>, vector<1x128xf32>
    %c0_24 = arith.constant 0 : index
    %c0_25 = arith.constant 0 : index
    %23 = vector.load %arg13[%c0_24, %c0_25] : memref<1x128xf32, #tpu.memory_space<vmem>>, vector<1x128xf32>
    %24 = arith.mulf %22, %23 : vector<1x128xf32>
    %25 = arith.addf %21, %24 : vector<1x128xf32>
    %cst_26 = arith.constant dense<0.000000e+00> : vector<8x128xf32>
    %26 = tpu.matmul %15, %20, %cst_26 {dimension_numbers = #tpu.dot_dimension_numbers<[1], [0], [0], [1], [0, 0, 1, 1], [], []>} : vector<8x128xf32>, vector<128x128xf32>, vector<8x128xf32> -> vector<8x128xf32>
    %27 = vector.broadcast %25 : vector<1x128xf32> to vector<8x128xf32>
    %28 = arith.addf %26, %27 : vector<8x128xf32>
    %cst_27 = arith.constant 0.000000e+00 : f32
    %29 = vector.broadcast %cst_27 : f32 to vector<8x128xf32>
    %30 = arith.maximumf %28, %29 : vector<8x128xf32>
    %c0_28 = arith.constant 0 : index
    %c0_29 = arith.constant 0 : index
    %31 = vector.load %arg14[%c0_28, %c0_29] : memref<128x128xf32, #tpu.memory_space<vmem>>, vector<128x128xf32>
    %c0_30 = arith.constant 0 : index
    %c0_31 = arith.constant 0 : index
    %32 = vector.load %arg15[%c0_30, %c0_31] : memref<128x128xf32, #tpu.memory_space<vmem>>, vector<128x128xf32>
    %c0_32 = arith.constant 0 : index
    %c0_33 = arith.constant 0 : index
    %33 = vector.load %arg16[%c0_32, %c0_33] : memref<128x128xf32, #tpu.memory_space<vmem>>, vector<128x128xf32>
    %34 = arith.mulf %32, %33 : vector<128x128xf32>
    %35 = arith.addf %31, %34 : vector<128x128xf32>
    %c0_34 = arith.constant 0 : index
    %c0_35 = arith.constant 0 : index
    %36 = vector.load %arg17[%c0_34, %c0_35] : memref<1x128xf32, #tpu.memory_space<vmem>>, vector<1x128xf32>
    %c0_36 = arith.constant 0 : index
    %c0_37 = arith.constant 0 : index
    %37 = vector.load %arg18[%c0_36, %c0_37] : memref<1x128xf32, #tpu.memory_space<vmem>>, vector<1x128xf32>
    %c0_38 = arith.constant 0 : index
    %c0_39 = arith.constant 0 : index
    %38 = vector.load %arg19[%c0_38, %c0_39] : memref<1x128xf32, #tpu.memory_space<vmem>>, vector<1x128xf32>
    %39 = arith.mulf %37, %38 : vector<1x128xf32>
    %40 = arith.addf %36, %39 : vector<1x128xf32>
    %cst_40 = arith.constant dense<0.000000e+00> : vector<8x128xf32>
    %41 = tpu.matmul %30, %35, %cst_40 {dimension_numbers = #tpu.dot_dimension_numbers<[1], [0], [0], [1], [0, 0, 1, 1], [], []>} : vector<8x128xf32>, vector<128x128xf32>, vector<8x128xf32> -> vector<8x128xf32>
    %42 = vector.broadcast %40 : vector<1x128xf32> to vector<8x128xf32>
    %43 = arith.addf %41, %42 : vector<8x128xf32>
    %c0_41 = arith.constant 0 : index
    %c0_42 = arith.constant 0 : index
    %44 = vector.load %arg20[%c0_41, %c0_42] : memref<8x128xf32, #tpu.memory_space<vmem>>, vector<8x128xf32>
    tpu.vector_store %arg20[%c0_41, %c0_42], %43 {strides = array<i32>} : memref<8x128xf32, #tpu.memory_space<vmem>>, vector<8x128xf32>,
    return
  }
  func.func @transform_0(%arg0: i32) -> (i32, i32) {
    %c0_i32 = arith.constant 0 : i32
    %c0_i32_0 = arith.constant 0 : i32
    %c0_i32_1 = arith.constant 0 : i32
    return %c0_i32, %c0_i32_0 : i32, i32
  }
  func.func @transform_1(%arg0: i32) -> (i32, i32) {
    %c0_i32 = arith.constant 0 : i32
    %c0_i32_0 = arith.constant 0 : i32
    %c0_i32_1 = arith.constant 0 : i32
    return %c0_i32, %c0_i32_0 : i32, i32
  }
  func.func @transform_2(%arg0: i32) -> (i32, i32) {
    %c0_i32 = arith.constant 0 : i32
    %c0_i32_0 = arith.constant 0 : i32
    %c0_i32_1 = arith.constant 0 : i32
    return %c0_i32, %c0_i32_0 : i32, i32
  }
  func.func @transform_3(%arg0: i32) -> (i32, i32) {
    %c0_i32 = arith.constant 0 : i32
    %c0_i32_0 = arith.constant 0 : i32
    %c0_i32_1 = arith.constant 0 : i32
    return %c0_i32, %c0_i32_0 : i32, i32
  }
  func.func @transform_4(%arg0: i32) -> (i32, i32) {
    %c0_i32 = arith.constant 0 : i32
    %c0_i32_0 = arith.constant 0 : i32
    %c0_i32_1 = arith.constant 0 : i32
    return %c0_i32, %c0_i32_0 : i32, i32
  }
  func.func @transform_5(%arg0: i32) -> (i32, i32) {
    %c0_i32 = arith.constant 0 : i32
    %c0_i32_0 = arith.constant 0 : i32
    %c0_i32_1 = arith.constant 0 : i32
    return %c0_i32, %c0_i32_0 : i32, i32
  }
  func.func @transform_6(%arg0: i32) -> (i32, i32) {
    %c0_i32 = arith.constant 0 : i32
    %c0_i32_0 = arith.constant 0 : i32
    %c0_i32_1 = arith.constant 0 : i32
    return %c0_i32, %c0_i32_0 : i32, i32
  }
  func.func @transform_7(%arg0: i32) -> (i32, i32) {
    %c0_i32 = arith.constant 0 : i32
    %c0_i32_0 = arith.constant 0 : i32
    %c0_i32_1 = arith.constant 0 : i32
    return %c0_i32, %c0_i32_0 : i32, i32
  }
  func.func @transform_8(%arg0: i32) -> (i32, i32) {
    %c0_i32 = arith.constant 0 : i32
    %c0_i32_0 = arith.constant 0 : i32
    %c0_i32_1 = arith.constant 0 : i32
    return %c0_i32, %c0_i32_0 : i32, i32
  }
  func.func @transform_9(%arg0: i32) -> (i32, i32) {
    %c0_i32 = arith.constant 0 : i32
    %c0_i32_0 = arith.constant 0 : i32
    %c0_i32_1 = arith.constant 0 : i32
    return %c0_i32, %c0_i32_0 : i32, i32
  }
  func.func @transform_10(%arg0: i32) -> (i32, i32) {
    %c0_i32 = arith.constant 0 : i32
    %c0_i32_0 = arith.constant 0 : i32
    %c0_i32_1 = arith.constant 0 : i32
    return %c0_i32, %c0_i32_0 : i32, i32
  }
  func.func @transform_11(%arg0: i32) -> (i32, i32) {
    %c0_i32 = arith.constant 0 : i32
    %c0_i32_0 = arith.constant 0 : i32
    %c0_i32_1 = arith.constant 0 : i32
    return %c0_i32, %c0_i32_0 : i32, i32
  }
  func.func @transform_12(%arg0: i32) -> (i32, i32) {
    %c0_i32 = arith.constant 0 : i32
    %c0_i32_0 = arith.constant 0 : i32
    %c0_i32_1 = arith.constant 0 : i32
    return %c0_i32, %c0_i32_0 : i32, i32
  }
  func.func @transform_13(%arg0: i32) -> (i32, i32) {
    %c0_i32 = arith.constant 0 : i32
    %c0_i32_0 = arith.constant 0 : i32
    %c0_i32_1 = arith.constant 0 : i32
    return %c0_i32, %c0_i32_0 : i32, i32
  }
  func.func @transform_14(%arg0: i32) -> (i32, i32) {
    %c0_i32 = arith.constant 0 : i32
    %c0_i32_0 = arith.constant 0 : i32
    %c0_i32_1 = arith.constant 0 : i32
    return %c0_i32, %c0_i32_0 : i32, i32
  }
  func.func @transform_15(%arg0: i32) -> (i32, i32) {
    %c0_i32 = arith.constant 0 : i32
    %c0_i32_0 = arith.constant 0 : i32
    %c0_i32_1 = arith.constant 0 : i32
    return %c0_i32, %c0_i32_0 : i32, i32
  }
  func.func @transform_16(%arg0: i32) -> (i32, i32) {
    %c0_i32 = arith.constant 0 : i32
    %c0_i32_0 = arith.constant 0 : i32
    %c0_i32_1 = arith.constant 0 : i32
    return %c0_i32, %c0_i32_0 : i32, i32
  }
  func.func @transform_17(%arg0: i32) -> (i32, i32) {
    %c0_i32 = arith.constant 0 : i32
    %c0_i32_0 = arith.constant 0 : i32
    %c0_i32_1 = arith.constant 0 : i32
    return %c0_i32, %c0_i32_0 : i32, i32
  }
  func.func @transform_18(%arg0: i32) -> (i32, i32) {
    %c0_i32 = arith.constant 0 : i32
    %c0_i32_0 = arith.constant 0 : i32
    %c0_i32_1 = arith.constant 0 : i32
    return %c0_i32, %c0_i32_0 : i32, i32
  }
  func.func @transform_19(%arg0: i32) -> (i32, i32) {
    %c0_i32 = arith.constant 0 : i32
    %c0_i32_0 = arith.constant 0 : i32
    %c0_i32_1 = arith.constant 0 : i32
    return %c0_i32, %c0_i32_0 : i32, i32
  }
}

</mosaic_0001>

<bundles_post_ra>
// kernel: tpu_custom_call.1
= control target key start
LH: loop header
LB: loop body
LE: loop exit
PB: predicated region body
PF: predicated region fallthrough
CT: control target
= control target key end

     0   :  { %s1058_s0 = inlined_call_operand.hbm [shape: f32[8,128], index: 0, kind: input, shape index: {}]   ;;  %s1059_s1 = inlined_call_operand.hbm [shape: f32[128,128], index: 1, kind: input, shape index: {}]   ;;  %s1060_s2 = inlined_call_operand.hbm [shape: f32[128,128], index: 2, kind: input, shape index: {}]   ;;  %s1061_s3 = inlined_call_operand.hbm [shape: f32[128,128], index: 3, kind: input, shape index: {}]   ;;  %s1062_s4 = inlined_call_operand.vmem [shape: f32[1,128], index: 4, kind: input, shape index: {}]   ;;  %s1063_s5 = inlined_call_operand.vmem [shape: f32[1,128], index: 5, kind: input, shape index: {}]   ;;  %s1064_s6 = inlined_call_operand.vmem [shape: f32[1,128], index: 6, kind: input, shape index: {}]   ;;  %s1065_s7 = inlined_call_operand.hbm [shape: f32[128,128], index: 7, kind: input, shape index: {}]   ;;  %s1066_s8 = inlined_call_operand.hbm [shape: f32[128,128], index: 8, kind: input, shape index: {}]   ;;  %s1067_s9 = inlined_call_operand.hbm [shape: f32[128,128], index: 9, kind: input, shape index: {}]   ;;  %s1068_s10 = inlined_call_operand.vmem [shape: f32[1,128], index: 10, kind: input, shape index: {}]   ;;  %s1069_s11 = inlined_call_operand.vmem [shape: f32[1,128], index: 11, kind: input, shape index: {}]   ;;  %s1070_s12 = inlined_call_operand.vmem [shape: f32[1,128], index: 12, kind: input, shape index: {}]   ;;  %s1071_s13 = inlined_call_operand.hbm [shape: f32[128,128], index: 13, kind: input, shape index: {}]   ;;  %s1072_s14 = inlined_call_operand.hbm [shape: f32[128,128], index: 14, kind: input, shape index: {}]   ;;  %s1073_s15 = inlined_call_operand.hbm [shape: f32[128,128], index: 15, kind: input, shape index: {}]   ;;  %s1074_s16 = inlined_call_operand.vmem [shape: f32[1,128], index: 16, kind: input, shape index: {}]   ;;  %s1075_s17 = inlined_call_operand.vmem [shape: f32[1,128], index: 17, kind: input, shape index: {}]   ;;  %s1076_s18 = inlined_call_operand.vmem [shape: f32[1,128], index: 18, kind: input, shape index: {}]   ;;  %s1077_s19 = inlined_call_operand.hbm [shape: f32[8,128], index: 19, kind: output, shape index: {}]  }
   0x1   :  { %1078 = sst [smem:[#allocation27_spill]] %s1058_s0 }
   0x2   :  { %1079 = sst [smem:[#allocation28_spill]] %s1059_s1 }
   0x3   :  { %1080 = sst [smem:[#allocation29_spill]] %s1060_s2 }
   0x4   :  { %1081 = sst [smem:[#allocation30_spill]] %s1061_s3 }
   0x5   :  { %24 = vsyncpa [#allocation3], 0 }
   0x6   :  { %25 = vsyncpa [#allocation6], 0 }
   0x7   :  { %26 = vsyncpa [#allocation9], 0 }
   0x8   :  { %27 = vsyncpa [#allocation12], 0 }
   0x9   :  { %28 = vsyncpa [#allocation15], 0 }
   0xa   :  { %29 = vsyncpa [#allocation18], 0  ;;  %s1082_s20 = sld [smem:[#allocation28_spill]] }
  0x10   :  { %s46_s21 = sshll.u32 %s1082_s20, 4  ;;  %s47_s21 = int_to_ptr.hbm [resolvable:$true] %s46_s21 }
  0x11   :  { %30 = vsyncpa [#allocation4], 0  ;;  %s858_s1 = smov [#allocation5]   ;;  %s1083_s24 = sld [smem:[#allocation30_spill]] }
  0x12   :  { %s48_s22 = sshll.u32 %s858_s1, 4  ;;  %s859_s3 = smov 128   ;;  %s49_s22 = int_to_ptr.vmem [resolvable:$true] %s48_s22 }
  0x13   :  { %s860_s26 = smov 8   ;;  %s861_s27 = smov [#allocation8]  }
  0x14   :  { %54 = dma.hbm_to_vmem [thread:$0]  %s47_s21, 2048, %s49_s22, [#allocation6], %s859_s3, %s859_s3, %s860_s26  }
  0x15   :  { %s74_s28 = sshll.u32 %s861_s27, 4  ;;  %s104_s30 = sshll.u32 %s1066_s8, 4  ;;  %s75_s28 = int_to_ptr.vmem [resolvable:$true] %s74_s28  ;;  %s105_s30 = int_to_ptr.hbm [resolvable:$true] %s104_s30 }
  0x16   :  { %s136_s2 = sshll.u32 %s1071_s13, 4  ;;  %s862_s23 = smov [#allocation11]   ;;  %s137_s2 = int_to_ptr.hbm [resolvable:$true] %s136_s2 }
  0x17   :  { %s72_s25 = sshll.u32 %s1083_s24, 4  ;;  %s106_s24 = sshll.u32 %s862_s23, 4  ;;  %s73_s25 = int_to_ptr.hbm [resolvable:$true] %s72_s25  ;;  %s107_s24 = int_to_ptr.vmem [resolvable:$true] %s106_s24 }
  0x18   :  { %80 = dma.hbm_to_vmem [thread:$0]  %s73_s25, 2048, %s75_s28, [#allocation9], %s859_s3, %s859_s3, %s860_s26  }
  0x19   :  { %112 = dma.hbm_to_vmem [thread:$0]  %s105_s30, 2048, %s107_s24, [#allocation12], %s859_s3, %s859_s3, %s860_s26  }
  0x1a   :  { %s863_s21 = smov [#allocation14]   ;;  %s1084_s29 = sld [smem:[#allocation27_spill]] }
  0x1b   :  { %s138_s8 = sshll.u32 %s863_s21, 4  ;;  %s1085_s28 = sld [smem:[#allocation29_spill]]  ;;  %s139_s8 = int_to_ptr.vmem [resolvable:$true] %s138_s8 }
  0x1c   :  { %144 = dma.hbm_to_vmem [thread:$0]  %s137_s2, 2048, %s139_s8, [#allocation15], %s859_s3, %s859_s3, %s860_s26  }
  0x1d   :  { %s864_s1 = smov [#allocation2]   ;;  %s865_s30 = smov [#allocation7]  }
  0x1e   :  { %s38_s23 = sshll.u32 %s864_s1, 4  ;;  %s61_s24 = sshll.u32 %s865_s30, 4  ;;  %s39_s23 = int_to_ptr.vmem [resolvable:$true] %s38_s23  ;;  %s62_s24 = int_to_ptr.vmem [resolvable:$true] %s61_s24 }
  0x1f   :  { %s91_s27 = sshll.u32 %s1065_s7, 4  ;;  %s866_s13 = smov [#allocation10]   ;;  %s92_s27 = int_to_ptr.hbm [resolvable:$true] %s91_s27 }
  0x20   :  { %s36_s0 = sshll.u32 %s1084_s29, 4  ;;  %s117_s29 = sshll.u32 %s1067_s9, 4  ;;  %s37_s0 = int_to_ptr.hbm [resolvable:$true] %s36_s0  ;;  %s118_s29 = int_to_ptr.hbm [resolvable:$true] %s117_s29 }
  0x21   :  { %s59_s20 = sshll.u32 %s1085_s28, 4  ;;  %s93_s25 = sshll.u32 %s866_s13, 4  ;;  %s60_s20 = int_to_ptr.hbm [resolvable:$true] %s59_s20  ;;  %s94_s25 = int_to_ptr.vmem [resolvable:$true] %s93_s25 }
  0x22   :  { %41 = dma.hbm_to_vmem [thread:$0]  %s37_s0, 128, %s39_s23, [#allocation3]  }
  0x23   :  { %67 = dma.hbm_to_vmem [thread:$0]  %s60_s20, 2048, %s62_s24, [#allocation6], %s859_s3, %s859_s3, %s860_s26  }
  0x24   :  { %99 = dma.hbm_to_vmem [thread:$0]  %s92_s27, 2048, %s94_s25, [#allocation9], %s859_s3, %s859_s3, %s860_s26  }
  0x25   :  { %s867_s0 = smov [#allocation13]   ;;  %s149_s23 = sshll.u32 %s1072_s14, 4  ;;  %s150_s23 = int_to_ptr.hbm [resolvable:$true] %s149_s23 }
  0x26   :  { %s119_s7 = sshll.u32 %s867_s0, 4  ;;  %s162_s30 = sshll.u32 %s1073_s15, 4  ;;  %s120_s7 = int_to_ptr.vmem [resolvable:$true] %s119_s7  ;;  %s163_s30 = int_to_ptr.hbm [resolvable:$true] %s162_s30 }
  0x27   :  { %125 = dma.hbm_to_vmem [thread:$0]  %s118_s29, 2048, %s120_s7, [#allocation12], %s859_s3, %s859_s3, %s860_s26  }
  0x28   :  { %s868_s24 = smov [#allocation16]   ;;  %s869_s22 = smov [#allocation17]  }
  0x29   :  { %s151_s21 = sshll.u32 %s868_s24, 4  ;;  %s164_s14 = sshll.u32 %s869_s22, 4  ;;  %s152_s21 = int_to_ptr.vmem [resolvable:$true] %s151_s21  ;;  %s165_s14 = int_to_ptr.vmem [resolvable:$true] %s164_s14 }
  0x2a   :  { %157 = dma.hbm_to_vmem [thread:$0]  %s150_s23, 2048, %s152_s21, [#allocation15], %s859_s3, %s859_s3, %s860_s26  }
  0x2b   :  { %170 = dma.hbm_to_vmem [thread:$0]  %s163_s30, 2048, %s165_s14, [#allocation18], %s859_s3, %s859_s3, %s860_s26  }
  0x2c   :  { %844 = dma.done.wait [#allocation3], 128  }
  0x2d   :  { %845 = vsyncadd [#allocation3], 4294967168 }
  0x2e   :  { %846 = dma.done.wait [#allocation6], 4096  }
  0x2f   :  { %847 = vsyncadd [#allocation6], 4294963200 }
  0x30   :  { %848 = dma.done.wait [#allocation9], 4096  }
  0x31   :  { %849 = vsyncadd [#allocation9], 4294963200 }
  0x32   :  { %850 = dma.done.wait [#allocation12], 4096  }
  0x33   :  { %851 = vsyncadd [#allocation12], 4294963200 }
  0x34   :  { %852 = dma.done.wait [#allocation15], 4096  }
  0x35   :  { %853 = vsyncadd [#allocation15], 4294963200 }
  0x36   :  { %854 = dma.done.wait [#allocation18], 2048  }
  0x37   :  { %855 = vsyncadd [#allocation18], 4294965248  ;;  %v233_v0 = vld [vmem:[#allocation5 + $0x78] sm:$0xff]  ;;  %v232_v4 = vld [vmem:[#allocation5 + $0x70] sm:$0xff]  ;;  %s552_s30 = sshll.u32 %s1077_s19, 4  ;;  %s553_s30 = int_to_ptr.hbm [resolvable:$true] %s552_s30 }
  0x38   :  { %v249_v1 = vld [vmem:[#allocation7 + $0x78] sm:$0xff]  ;;  %v248_v5 = vld [vmem:[#allocation7 + $0x70] sm:$0xff]  ;;  %v231_v8 = vld [vmem:[#allocation5 + $0x68] sm:$0xff] }
  0x39   :  { %v265_v2 = vld [vmem:[#allocation8 + $0x78] sm:$0xff]  ;;  %v264_v6 = vld [vmem:[#allocation8 + $0x70] sm:$0xff]  ;;  %v247_v9 = vld [vmem:[#allocation7 + $0x68] sm:$0xff] }
  0x3a   :  { %v281_v3 = vmul.f32 %v265_v2, %v249_v1  ;;  %v280_v7 = vmul.f32 %v264_v6, %v248_v5  ;;  %v263_v10 = vld [vmem:[#allocation8 + $0x68] sm:$0xff]  ;;  %v246_v13 = vld [vmem:[#allocation7 + $0x60] sm:$0xff]  ;;  %v245_v18 = vld [vmem:[#allocation7 + $0x58] sm:$0xff] }
  0x3b   :  { %v279_v12 = vmul.f32 %v263_v10, %v247_v9  ;;  %v262_v14 = vld [vmem:[#allocation8 + $0x60] sm:$0xff]  ;;  %v261_v19 = vld [vmem:[#allocation8 + $0x58] sm:$0xff]  ;;  %v244_v22 = vld [vmem:[#allocation7 + $0x50] sm:$0xff] }
  0x3c   :  { %v297_v11 = vadd.f32 %v281_v3, %v233_v0  ;;  %v296_v15 = vadd.f32 %v280_v7, %v232_v4  ;;  %v230_v16 = vld [vmem:[#allocation5 + $0x60] sm:$0xff]  ;;  %v278_v17 = vmul.f32 %v262_v14, %v246_v13  ;;  %v277_v21 = vmul.f32 %v261_v19, %v245_v18  ;;  %v260_v23 = vld [vmem:[#allocation8 + $0x50] sm:$0xff]  ;;  %v229_v24 = vld [vmem:[#allocation5 + $0x58] sm:$0xff] }
  0x3d   :  { %v295_v20 = vadd.f32 %v279_v12, %v231_v8  ;;  %v243_v25 = vld [vmem:[#allocation7 + $0x48] sm:$0xff]  ;;  %v276_v28 = vmul.f32 %v260_v23, %v244_v22  ;;  %v228_v29 = vld [vmem:[#allocation5 + $0x50] sm:$0xff]  ;;  %v242_v30 = vld [vmem:[#allocation7 + $0x40] sm:$0xff] }
  0x3e   :  { %306 = vmatpush.msra.mxu0 %v297_v11  ;;  %v259_v26 = vld [vmem:[#allocation8 + $0x48] sm:$0xff]  ;;  %v294_v27 = vadd.f32 %v278_v17, %v230_v16  ;;  %v258_v31 = vld [vmem:[#allocation8 + $0x40] sm:$0xff]  ;;  %v293_v32 = vadd.f32 %v277_v21, %v229_v24  ;;  %v241_v35 = vld [vmem:[#allocation7 + $0x38] sm:$0xff] }
  0x3f   :  { %v275_v33 = vmul.f32 %v259_v26, %v243_v25  ;;  %v227_v34 = vld [vmem:[#allocation5 + $0x48] sm:$0xff]  ;;  %v257_v36 = vld [vmem:[#allocation8 + $0x38] sm:$0xff]  ;;  %v292_v37 = vadd.f32 %v276_v28, %v228_v29  ;;  %v274_v38 = vmul.f32 %v258_v31, %v242_v30  ;;  %v226_v39 = vld [vmem:[#allocation5 + $0x40] sm:$0xff] }
  0x40   :  { %307 = vmatpush.msra.mxu0 %v296_v15  ;;  %v240_v40 = vld [vmem:[#allocation7 + $0x30] sm:$0xff]  ;;  %v273_v43 = vmul.f32 %v257_v36, %v241_v35  ;;  %v225_v44 = vld [vmem:[#allocation5 + $0x38] sm:$0xff]  ;;  %v239_v45 = vld [vmem:[#allocation7 + $0x28] sm:$0xff] }
  0x41   :  { %v256_v41 = vld [vmem:[#allocation8 + $0x30] sm:$0xff]  ;;  %v291_v42 = vadd.f32 %v275_v33, %v227_v34  ;;  %v255_v46 = vld [vmem:[#allocation8 + $0x28] sm:$0xff]  ;;  %v290_v47 = vadd.f32 %v274_v38, %v226_v39  ;;  %v238_v50 = vld [vmem:[#allocation7 + $0x20] sm:$0xff] }
  0x42   :  { %308 = vmatpush.msra.mxu0 %v295_v20  ;;  %v224_v48 = vld [vmem:[#allocation5 + $0x30] sm:$0xff]  ;;  %v272_v49 = vmul.f32 %v256_v41, %v240_v40  ;;  %v254_v51 = vld [vmem:[#allocation8 + $0x20] sm:$0xff]  ;;  %v223_v52 = vld [vmem:[#allocation5 + $0x28] sm:$0xff]  ;;  %v289_v56 = vadd.f32 %v273_v43, %v225_v44  ;;  %v271_v57 = vmul.f32 %v255_v46, %v239_v45 }
  0x43   :  { %v237_v53 = vld [vmem:[#allocation7 + $0x18] sm:$0xff]  ;;  %v357_v60 = vld [vmem:[#allocation11 + $0x70] sm:$0xff]  ;;  %v222_v61 = vld [vmem:[#allocation5 + $0x20] sm:$0xff]  ;;  %v270_v4 = vmul.f32 %v254_v51, %v238_v50 }
  0x44   :  { %309 = vmatpush.msra.mxu0 %v294_v27  ;;  %v253_v54 = vld [vmem:[#allocation8 + $0x18] sm:$0xff]  ;;  %v236_v62 = vld [vmem:[#allocation7 + $0x10] sm:$0xff]  ;;  %v356_v2 = vld [vmem:[#allocation11 + $0x68] sm:$0xff]  ;;  %v288_v3 = vadd.f32 %v272_v49, %v224_v48  ;;  %v287_v15 = vadd.f32 %v271_v57, %v223_v52 }
  0x45   :  { %v358_v55 = vld [vmem:[#allocation11 + $0x78] sm:$0xff]  ;;  %v341_v0 = vld [vmem:[#allocation10 + $0x70] sm:$0xff]  ;;  %v340_v6 = vld [vmem:[#allocation10 + $0x68] sm:$0xff]  ;;  %v269_v16 = vmul.f32 %v253_v54, %v237_v53  ;;  %v286_v27 = vadd.f32 %v270_v4, %v222_v61 }
  0x46   :  { %310 = vmatpush.msra.mxu0 %v293_v32  ;;  %v342_v58 = vld [vmem:[#allocation10 + $0x78] sm:$0xff]  ;;  %v373_v1 = vld [vmem:[#allocation13 + $0x70] sm:$0xff]  ;;  %v372_v7 = vld [vmem:[#allocation13 + $0x68] sm:$0xff] }
  0x47   :  { %v374_v59 = vld [vmem:[#allocation13 + $0x78] sm:$0xff]  ;;  %v389_v5 = vmul.f32 %v373_v1, %v357_v60  ;;  %v355_v8 = vld [vmem:[#allocation11 + $0x60] sm:$0xff]  ;;  %v252_v10 = vld [vmem:[#allocation8 + $0x10] sm:$0xff]  ;;  %v388_v12 = vmul.f32 %v372_v7, %v356_v2 }
  0x48   :  { %311 = vmatpush.msra.mxu0 %v292_v37  ;;  %v390_v63 = vmul.f32 %v374_v59, %v358_v55  ;;  %v221_v9 = vld [vmem:[#allocation5 + $0x18] sm:$0xff]  ;;  %v371_v13 = vld [vmem:[#allocation13 + $0x60] sm:$0xff]  ;;  %v353_v21 = vld [vmem:[#allocation11 + $0x50] sm:$0xff]  ;;  %v268_v28 = vmul.f32 %v252_v10, %v236_v62 }
  0x49   :  { %v354_v14 = vld [vmem:[#allocation11 + $0x58] sm:$0xff]  ;;  %v405_v17 = vadd.f32 %v389_v5, %v341_v0  ;;  %v339_v18 = vld [vmem:[#allocation10 + $0x60] sm:$0xff]  ;;  %v387_v19 = vmul.f32 %v371_v13, %v355_v8  ;;  %v235_v22 = vld [vmem:[#allocation7 + $0x8] sm:$0xff]  ;;  %v404_v24 = vadd.f32 %v388_v12, %v340_v6  ;;  %v285_v37 = vadd.f32 %v269_v16, %v221_v9 }
  0x4a   :  { %312 = vmatpush.msra.mxu0 %v291_v42  ;;  %v406_v11 = vadd.f32 %v390_v63, %v342_v58  ;;  %v370_v20 = vld [vmem:[#allocation13 + $0x58] sm:$0xff]  ;;  %v251_v23 = vld [vmem:[#allocation8 + $0x8] sm:$0xff]  ;;  %v369_v26 = vld [vmem:[#allocation13 + $0x50] sm:$0xff] }
  0x4b   :  { %v386_v25 = vmul.f32 %v370_v20, %v354_v14  ;;  %v338_v29 = vld [vmem:[#allocation10 + $0x58] sm:$0xff]  ;;  %v352_v30 = vld [vmem:[#allocation11 + $0x48] sm:$0xff]  ;;  %v220_v32 = vld [vmem:[#allocation5 + $0x10] sm:$0xff]  ;;  %v403_v35 = vadd.f32 %v387_v19, %v339_v18  ;;  %v385_v36 = vmul.f32 %v369_v26, %v353_v21  ;;  %v267_v38 = vmul.f32 %v251_v23, %v235_v22 }
  0x4c   :  { %313 = vmatpush.msra.mxu0 %v290_v47  ;;  %415 = vmatpush.msra.mxu1 %v406_v11  ;;  %v368_v31 = vld [vmem:[#allocation13 + $0x48] sm:$0xff]  ;;  %v234_v33 = vld [vmem:[#allocation7] sm:$0xff]  ;;  %v337_v39 = vld [vmem:[#allocation10 + $0x50] sm:$0xff]  ;;  %v284_v45 = vadd.f32 %v268_v28, %v220_v32 }
  0x4d   :  { %v250_v34 = vld [vmem:[#allocation8] sm:$0xff]  ;;  %v219_v42 = vld [vmem:[#allocation5 + $0x8] sm:$0xff]  ;;  %v402_v43 = vadd.f32 %v386_v25, %v338_v29  ;;  %v384_v44 = vmul.f32 %v368_v31, %v352_v30  ;;  %v350_v48 = vld [vmem:[#allocation11 + $0x38] sm:$0xff]  ;;  %v401_v51 = vadd.f32 %v385_v36, %v337_v39 }
  0x4e   :  { %314 = vmatpush.msra.mxu0 %v289_v56  ;;  %416 = vmatpush.msra.mxu1 %v405_v17  ;;  %v351_v40 = vld [vmem:[#allocation11 + $0x40] sm:$0xff]  ;;  %v266_v46 = vmul.f32 %v250_v34, %v234_v33  ;;  %v336_v47 = vld [vmem:[#allocation10 + $0x48] sm:$0xff]  ;;  %v366_v49 = vld [vmem:[#allocation13 + $0x38] sm:$0xff]  ;;  %v283_v53 = vadd.f32 %v267_v38, %v219_v42 }
  0x4f   :  { %v367_v41 = vld [vmem:[#allocation13 + $0x40] sm:$0xff]  ;;  %v349_v55 = vld [vmem:[#allocation11 + $0x30] sm:$0xff]  ;;  %v400_v57 = vadd.f32 %v384_v44, %v336_v47  ;;  %v382_v58 = vmul.f32 %v366_v49, %v350_v48  ;;  %v334_v60 = vld [vmem:[#allocation10 + $0x38] sm:$0xff] }
  0x50   :  { %315 = vmatpush.msra.mxu0 %v288_v3  ;;  %417 = vmatpush.msra.mxu1 %v404_v24  ;;  %v218_v50 = vld [vmem:[#allocation5] sm:$0xff]  ;;  %v383_v52 = vmul.f32 %v367_v41, %v351_v40  ;;  %v365_v56 = vld [vmem:[#allocation13 + $0x30] sm:$0xff]  ;;  %v348_v61 = vld [vmem:[#allocation11 + $0x28] sm:$0xff] }
  0x51   :  { %v335_v54 = vld [vmem:[#allocation10 + $0x40] sm:$0xff]  ;;  %v282_v59 = vadd.f32 %v266_v46, %v218_v50  ;;  %v364_v62 = vld [vmem:[#allocation13 + $0x28] sm:$0xff]  ;;  %v217_v63 = vld [vmem:[#allocation2] sm:$0xff]  ;;  %v381_v1 = vmul.f32 %v365_v56, %v349_v55  ;;  %v398_v5 = vadd.f32 %v382_v58, %v334_v60 }
  0x52   :  { %316 = vmatpush.msra.mxu0 %v287_v15  ;;  %418 = vmatpush.msra.mxu1 %v403_v35  ;;  %v399_v0 = vadd.f32 %v383_v52, %v335_v54  ;;  %v333_v2 = vld [vmem:[#allocation10 + $0x30] sm:$0xff]  ;;  %v347_v3 = vld [vmem:[#allocation11 + $0x20] sm:$0xff]  ;;  %v380_v6 = vmul.f32 %v364_v62, %v348_v61  ;;  %v332_v7 = vld [vmem:[#allocation10 + $0x28] sm:$0xff] }
  0x53   :  { %v363_v4 = vld [vmem:[#allocation13 + $0x20] sm:$0xff]  ;;  %v346_v8 = vld [vmem:[#allocation11 + $0x18] sm:$0xff]  ;;  %v397_v10 = vadd.f32 %v381_v1, %v333_v2  ;;  %v345_v18 = vld [vmem:[#allocation11 + $0x10] sm:$0xff] }
  0x54   :  { %317 = vmatpush.msra.mxu0 %v286_v27  ;;  %419 = vmatpush.msra.mxu1 %v402_v43  ;;  %v362_v9 = vld [vmem:[#allocation13 + $0x18] sm:$0xff]  ;;  %v379_v11 = vmul.f32 %v363_v4, %v347_v3  ;;  %v331_v12 = vld [vmem:[#allocation10 + $0x20] sm:$0xff]  ;;  %v396_v13 = vadd.f32 %v380_v6, %v332_v7  ;;  %v361_v19 = vld [vmem:[#allocation13 + $0x10] sm:$0xff] }
  0x55   :  { %v378_v14 = vmul.f32 %v362_v9, %v346_v8  ;;  %v330_v15 = vld [vmem:[#allocation10 + $0x18] sm:$0xff]  ;;  %v377_v20 = vmul.f32 %v361_v19, %v345_v18  ;;  %v329_v21 = vld [vmem:[#allocation10 + $0x10] sm:$0xff]  ;;  %v344_v22 = vld [vmem:[#allocation11 + $0x8] sm:$0xff] }
  0x56   :  { %318 = vmatpush.msra.mxu0 %v285_v37  ;;  %420 = vmatpush.msra.mxu1 %v401_v51  ;;  %v395_v16 = vadd.f32 %v379_v11, %v331_v12  ;;  %v360_v23 = vld [vmem:[#allocation13 + $0x8] sm:$0xff]  ;;  %v343_v27 = vld [vmem:[#allocation11] sm:$0xff]  ;;  %v451_v33 = vld [vmem:[#allocation14 + $0x78] sm:$0xff] }
  0x57   :  { %v394_v17 = vadd.f32 %v378_v14, %v330_v15  ;;  %v393_v24 = vadd.f32 %v377_v20, %v329_v21  ;;  %v376_v25 = vmul.f32 %v360_v23, %v344_v22  ;;  %v328_v26 = vld [vmem:[#allocation10 + $0x8] sm:$0xff]  ;;  %v359_v28 = vld [vmem:[#allocation13] sm:$0xff]  ;;  %v467_v34 = vld [vmem:[#allocation16 + $0x78] sm:$0xff] }
  0x58   :  { %319 = vmatpush.msra.mxu0 %v284_v45  ;;  %421 = vmatpush.msra.mxu1 %v400_v57  ;;  %v375_v30 = vmul.f32 %v359_v28, %v343_v27  ;;  %v327_v31 = vld [vmem:[#allocation10] sm:$0xff]  ;;  %v483_v35 = vld [vmem:[#allocation17 + $0x78] sm:$0xff]  ;;  %v450_v37 = vld [vmem:[#allocation14 + $0x70] sm:$0xff] }
  0x59   :  { %v392_v29 = vadd.f32 %v376_v25, %v328_v26  ;;  %v499_v36 = vmul.f32 %v483_v35, %v467_v34  ;;  %v466_v38 = vld [vmem:[#allocation16 + $0x70] sm:$0xff]  ;;  %v449_v41 = vld [vmem:[#allocation14 + $0x68] sm:$0xff]  ;;  %v464_v46 = vld [vmem:[#allocation16 + $0x60] sm:$0xff] }
  0x5a   :  { %320 = vmatpush.msra.mxu0 %v283_v53  ;;  %422 = vmatpush.msra.mxu1 %v399_v0  ;;  %v391_v32 = vadd.f32 %v375_v30, %v327_v31  ;;  %v482_v39 = vld [vmem:[#allocation17 + $0x70] sm:$0xff]  ;;  %v465_v42 = vld [vmem:[#allocation16 + $0x68] sm:$0xff]  ;;  %v480_v47 = vld [vmem:[#allocation17 + $0x60] sm:$0xff] }
  0x5b   :  { %v498_v40 = vmul.f32 %v482_v39, %v466_v38  ;;  %v481_v43 = vld [vmem:[#allocation17 + $0x68] sm:$0xff]  ;;  %v515_v44 = vadd.f32 %v499_v36, %v451_v33  ;;  %v448_v49 = vld [vmem:[#allocation14 + $0x60] sm:$0xff]  ;;  %v496_v50 = vmul.f32 %v480_v47, %v464_v46  ;;  %v463_v51 = vld [vmem:[#allocation16 + $0x58] sm:$0xff] }
  0x5c   :  { %321 = vmatpush.msra.mxu0 %v282_v59  ;;  %423 = vmatpush.msra.mxu1 %v398_v5  ;;  %v497_v45 = vmul.f32 %v481_v43, %v465_v42  ;;  %v479_v52 = vld [vmem:[#allocation17 + $0x58] sm:$0xff]  ;;  %v462_v55 = vld [vmem:[#allocation16 + $0x50] sm:$0xff]  ;;  %v461_v58 = vld [vmem:[#allocation16 + $0x48] sm:$0xff] }
  0x5d   :  { %322 = vmatmul.f32.vlgmr.msra.gmra.mxu0 %v217_v63  ;;  %v514_v48 = vadd.f32 %v498_v40, %v450_v37  ;;  %524 = vmatpush.msra.mxu2 %v515_v44  ;;  %v495_v54 = vmul.f32 %v479_v52, %v463_v51  ;;  %v478_v56 = vld [vmem:[#allocation17 + $0x50] sm:$0xff]  ;;  %v447_v57 = vld [vmem:[#allocation14 + $0x58] sm:$0xff]  ;;  %v477_v59 = vld [vmem:[#allocation17 + $0x48] sm:$0xff]  ;;  %v512_v60 = vadd.f32 %v496_v50, %v448_v49 }
  0x5e   :  { %424 = vmatpush.msra.mxu1 %v397_v10  ;;  %v513_v53 = vadd.f32 %v497_v45, %v449_v41  ;;  %v494_v61 = vmul.f32 %v478_v56, %v462_v55  ;;  %v446_v62 = vld [vmem:[#allocation14 + $0x50] sm:$0xff]  ;;  %v460_v63 = vld [vmem:[#allocation16 + $0x40] sm:$0xff]  ;;  %v493_v2 = vmul.f32 %v477_v59, %v461_v58  ;;  %v445_v3 = vld [vmem:[#allocation14 + $0x48] sm:$0xff] }
  0x5f   :  { %525 = vmatpush.msra.mxu2 %v514_v48  ;;  %v476_v0 = vld [vmem:[#allocation17 + $0x40] sm:$0xff]  ;;  %v511_v1 = vadd.f32 %v495_v54, %v447_v57  ;;  %v459_v4 = vld [vmem:[#allocation16 + $0x38] sm:$0xff]  ;;  %v458_v9 = vld [vmem:[#allocation16 + $0x30] sm:$0xff] }
  0x60   :  { %425 = vmatpush.msra.mxu1 %v396_v13  ;;  %v475_v5 = vld [vmem:[#allocation17 + $0x38] sm:$0xff]  ;;  %v510_v6 = vadd.f32 %v494_v61, %v446_v62  ;;  %v492_v7 = vmul.f32 %v476_v0, %v460_v63  ;;  %v444_v8 = vld [vmem:[#allocation14 + $0x40] sm:$0xff]  ;;  %v474_v10 = vld [vmem:[#allocation17 + $0x30] sm:$0xff]  ;;  %v509_v13 = vadd.f32 %v493_v2, %v445_v3 }
  0x61   :  { %526 = vmatpush.msra.mxu2 %v513_v53  ;;  %v299_v11 = vld [vmem:[%s1063_s5] sm:$0x1]  ;;  %v491_v14 = vmul.f32 %v475_v5, %v459_v4  ;;  %v490_v19 = vmul.f32 %v474_v10, %v458_v9  ;;  %v442_v21 = vld [vmem:[#allocation14 + $0x30] sm:$0xff]  ;;  %v456_v22 = vld [vmem:[#allocation16 + $0x20] sm:$0xff] }
  0x62   :  { %426 = vmatpush.msra.mxu1 %v395_v16  ;;  %v300_v12 = vld [vmem:[%s1064_s6] sm:$0x1]  ;;  %v457_v16 = vld [vmem:[#allocation16 + $0x28] sm:$0xff]  ;;  %v508_v18 = vadd.f32 %v492_v7, %v444_v8  ;;  %v472_v23 = vld [vmem:[#allocation17 + $0x20] sm:$0xff] }
  0x63   :  { %527 = vmatpush.msra.mxu2 %v512_v60  ;;  %v443_v15 = vld [vmem:[#allocation14 + $0x38] sm:$0xff]  ;;  %v301_v20 = vmul.f32 %v300_v12, %v299_v11  ;;  %v441_v27 = vld [vmem:[#allocation14 + $0x28] sm:$0xff]  ;;  %v506_v30 = vadd.f32 %v490_v19, %v442_v21  ;;  %v488_v31 = vmul.f32 %v472_v23, %v456_v22  ;;  %v440_v33 = vld [vmem:[#allocation14 + $0x20] sm:$0xff] }
  0x64   :  { %427 = vmatpush.msra.mxu1 %v394_v17  ;;  %v473_v17 = vld [vmem:[#allocation17 + $0x28] sm:$0xff]  ;;  %v507_v25 = vadd.f32 %v491_v14, %v443_v15  ;;  %v455_v28 = vld [vmem:[#allocation16 + $0x18] sm:$0xff]  ;;  %v454_v43 = vld [vmem:[#allocation16 + $0x10] sm:$0xff] }
  0x65   :  { %528 = vmatpush.msra.mxu2 %v511_v1  ;;  %v489_v26 = vmul.f32 %v473_v17, %v457_v16  ;;  %v439_v36 = vld [vmem:[#allocation14 + $0x18] sm:$0xff]  ;;  %v504_v37 = vadd.f32 %v488_v31, %v440_v33  ;;  %v470_v44 = vld [vmem:[#allocation17 + $0x10] sm:$0xff]  ;;  %v453_v47 = vld [vmem:[#allocation16 + $0x8] sm:$0xff] }
  0x66   :  { %428 = vmatpush.msra.mxu1 %v393_v24  ;;  %v298_v24 = vld [vmem:[%s1062_s4] sm:$0x1]  ;;  %v486_v45 = vmul.f32 %v470_v44, %v454_v43  ;;  %v438_v46 = vld [vmem:[#allocation14 + $0x10] sm:$0xff]  ;;  %v469_v48 = vld [vmem:[#allocation17 + $0x8] sm:$0xff] }
  0x67   :  { %529 = vmatpush.msra.mxu2 %v510_v6  ;;  %v505_v34 = vadd.f32 %v489_v26, %v441_v27  ;;  %v485_v50 = vmul.f32 %v469_v48, %v453_v47  ;;  %v437_v51 = vld [vmem:[#allocation14 + $0x8] sm:$0xff]  ;;  %v452_v52 = vld [vmem:[#allocation16] sm:$0xff]  ;;  %v408_v58 = vld [vmem:[%s1069_s11] sm:$0x1] }
  0x68   :  { %429 = vmatpush.msra.mxu1 %v392_v29  ;;  %v471_v29 = vld [vmem:[#allocation17 + $0x18] sm:$0xff]  ;;  %v502_v49 = vadd.f32 %v486_v45, %v438_v46  ;;  %v468_v53 = vld [vmem:[#allocation17] sm:$0xff] }
  0x69   :  { %530 = vmatpush.msra.mxu2 %v509_v13  ;;  %v487_v35 = vmul.f32 %v471_v29, %v455_v28  ;;  %v501_v54 = vadd.f32 %v485_v50, %v437_v51  ;;  %v484_v55 = vmul.f32 %v468_v53, %v452_v52  ;;  %v436_v56 = vld [vmem:[#allocation14] sm:$0xff]  ;;  %v409_v59 = vld [vmem:[%s1070_s12] sm:$0x1] }
  0x6a   :  { %430 = vmatpush.msra.mxu1 %v391_v32  ;;  %v302_v32 = vadd.f32 %v301_v20, %v298_v24  ;;  %v410_v60 = vmul.f32 %v409_v59, %v408_v58  ;;  %v407_v61 = vld [vmem:[%s1068_s10] sm:$0x1]  ;;  %s870_s10 = smov [#allocation19]  }
  0x6b   :  { %531 = vmatpush.msra.mxu2 %v508_v18  ;;  %v503_v39 = vadd.f32 %v487_v35, %v439_v36  ;;  %v500_v57 = vadd.f32 %v484_v55, %v436_v56  ;;  %v517_v3 = vld [vmem:[%s1075_s17] sm:$0x1]  ;;  %s550_s23 = sshll.u32 %s870_s10, 4  ;;  %s551_s23 = int_to_ptr.vmem [resolvable:$true] %s550_s23 }
  0x6c   :  { %v304_v38 = vperm.slane %v302_v32, 0  ;;  %v411_v62 = vadd.f32 %v410_v60, %v407_v61  ;;  %v518_v4 = vld [vmem:[%s1076_s18] sm:$0x1] }
  0x6d   :  { %532 = vmatpush.msra.mxu2 %v507_v25  ;;  %v519_v5 = vmul.f32 %v518_v4, %v517_v3  ;;  %v516_v6 = vld [vmem:[%s1074_s16] sm:$0x1] }
  0x6e   :  { %v413_v63 = vperm.slane %v411_v62, 0 }
  0x6f   :  { %533 = vmatpush.msra.mxu2 %v506_v30  ;;  %v520_v7 = vadd.f32 %v519_v5, %v516_v6 }
  0x71   :  { %534 = vmatpush.msra.mxu2 %v505_v34  ;;  %v522_v8 = vperm.slane %v520_v7, 0 }
  0x73   :  { %535 = vmatpush.msra.mxu2 %v504_v37 }
  0x75   :  { %536 = vmatpush.msra.mxu2 %v503_v39 }
  0x77   :  { %537 = vmatpush.msra.mxu2 %v502_v49 }
  0x79   :  { %538 = vmatpush.msra.mxu2 %v501_v54 }
  0x7b   :  { %539 = vmatpush.msra.mxu2 %v500_v57 }
  0xda   :  { %v323_v40 = vpop.f32.mrf.mxu0 }
  0xdb   :  { %v324_v41 = vadd.f32 %v323_v40, %v304_v38 }
  0xdd   :  { %v326_v42 = vmax.f32 %v324_v41, 0.0 }
  0xdf   :  { %431 = vmatmul.f32.vlgmr.msra.gmra.mxu1 %v326_v42 }
 0x15c   :  { %v432_v0 = vpop.f32.mrf.mxu1 }
 0x15d   :  { %v433_v1 = vadd.f32 %v432_v0, %v413_v63 }
 0x15f   :  { %v435_v2 = vmax.f32 %v433_v1, 0.0 }
 0x161   :  { %540 = vmatmul.f32.vlgmr.msra.gmra.mxu2 %v435_v2 }
 0x1e4   :  { %v541_v9 = vpop.f32.mrf.mxu2 }
 0x1e5   :  { %v542_v10 = vadd.f32 %v541_v9, %v522_v8 }
 0x1e7   :  { %544 = vst [vmem:[#allocation19] sm:$0xff] %v542_v10 }
 0x1e8   :  { %555 = dma.vmem_to_hbm [thread:$0]  %s551_s23, 128, %s553_s30, [#allocation4]  }
 0x1e9   :  { %856 = dma.done.wait [#allocation4], 128  }
 0x1ea   :  { %857 = vsyncadd [#allocation4], 4294967168 }
 0x1eb   :  { %560 = vsyncpa [#allocation3], 1 }
 0x1ec   :  { %561 = vsyncpa [#allocation6], 1 }
 0x1ed   :  { %562 = vsyncpa [#allocation9], 1 }
 0x1ee   :  { %563 = vsyncpa [#allocation12], 1 }
 0x1ef   :  { %564 = vsyncpa [#allocation15], 1 }
 0x1f0   :  { %565 = vsyncpa [#allocation18], 1 }
 0x1f1   :  { %566 = vsyncpa [#allocation4], 1 }

</bundles_post_ra>
